<compile_context>
chip_gen: v6e
topology: v6e:2x2x1
jax: 0.10.0
libtpu: 0.0.40
codegen_flags: <defaults>
</compile_context>

<pallas_src>
import functools

import jax
import jax.numpy as jnp
from jax.experimental import pallas as pl
from jax.experimental.pallas import tpu as pltpu

EPS = 0.01  # eps hyperparameter of the module (static constant)


def _cdiv(a, b):
    return -(-a // b)


def _round_up(a, b):
    return _cdiv(a, b) * b


def _regression_kernel(x_ref, w1_ref, b1_ref, w2_ref, b2_ref, w3_ref, b3_ref, o_ref,
                       *, n_valid, eps, block_cols, chunk_cols, num_chunks):
    """One grid step: forward a (14, block_cols) slab of x^T, emit a per-block partial sum."""
    i = pl.program_id(0)
    base_col = i * block_cols

    w1 = w1_ref[...]                         # (16, 14)  compute dtype (f32 or bf16)
    w2 = w2_ref[...].astype(jnp.float32)     # (32, 16)  activations stay f32 between layers
    w3 = w3_ref[...].astype(jnp.float32)     # (1, 32)

    # Bias broadcasts hoisted out of the chunk loop (JAX does not CSE broadcast_in_dim).
    b1b = jnp.broadcast_to(b1_ref[...], (w1_ref.shape[0], chunk_cols))   # (16, chunk) f32
    b2b = jnp.broadcast_to(b2_ref[...], (w2_ref.shape[0], chunk_cols))   # (32, chunk) f32
    b3b = jnp.broadcast_to(b3_ref[...], (1, chunk_cols))                 # (1,  chunk) f32

    lane = jax.lax.broadcasted_iota(jnp.int32, (1, chunk_cols), 1)

    def chunk_body(c, acc):
        start = pl.multiple_of(c * chunk_cols, 128)
        xc = x_ref[:, pl.ds(start, chunk_cols)]                                 # (14, chunk)

        h1 = jnp.maximum(jnp.dot(w1, xc, preferred_element_type=jnp.float32) + b1b, 0.0)
        h2 = jnp.maximum(jnp.dot(w2, h1, preferred_element_type=jnp.float32) + b2b, 0.0)
        y = jnp.dot(w3, h2, preferred_element_type=jnp.float32) + b3b           # (1, chunk)

        # sum(y[y>eps]) - sum(y[y<-eps])  ==  sum(|y| where |y| > eps)   (eps > 0, disjoint)
        # Tail / out-of-bounds columns (partial edge block) masked by global column index.
        col = base_col + start + lane
        ay = jnp.abs(y)
        keep = jnp.logical_and(ay > eps, col < n_valid)
        return acc + jnp.where(keep, ay, jnp.float32(0.0))

    acc = jax.lax.fori_loop(0, num_chunks, chunk_body,
                            jnp.zeros((1, chunk_cols), jnp.float32), unroll=4)

    # Lane-dense per-block partial output; reduced in the wrapper.
    o_ref[...] = acc.reshape(1, 1, chunk_cols)


def regression_forward_xt(xt, params, *, eps=EPS, block_cols=32768, chunk_cols=256):
    """Forward pass on x already stored transposed: xt of shape (14, N), any float dtype.

    This is the zero-extra-HBM-pass entry point (no transpose / pad / cast of x in the
    wrapper). Weights are cast to xt.dtype (tiny), biases stay f32.
    """
    w1, b1, w2, b2, w3, b3 = params
    d_in, n = xt.shape
    cdt = xt.dtype

    # Tiling: chunk is the inner-compute width (lane multiple), block is the DMA tile.
    chunk_cols = _round_up(max(int(chunk_cols), 128), 128)
    n_chunks = _cdiv(n, chunk_cols)
    target_cpb = max(1, int(block_cols) // chunk_cols)
    # >= 2 blocks when possible so the "parallel" axis can shard across v7x's two TCs;
    # balance chunks per block so padding waste is < num_blocks * chunk_cols columns.
    num_blocks = min(n_chunks, max(_cdiv(n_chunks, target_cpb), 2))
    chunks_per_block = _cdiv(n_chunks, num_blocks)
    num_blocks = _cdiv(n_chunks, chunks_per_block)
    block_cols_eff = chunks_per_block * chunk_cols

    # Tiny resident operands: weights as [out, in] in compute dtype, biases as [out, 1] f32.
    w1t = w1.T.astype(cdt)                              # (16, 14)
    w2t = w2.T.astype(cdt)                              # (32, 16)
    w3t = w3.T.astype(cdt)                              # (1, 32)
    b1t = b1.reshape(-1, 1).astype(jnp.float32)         # (16, 1)
    b2t = b2.reshape(-1, 1).astype(jnp.float32)         # (32, 1)
    b3t = b3.reshape(-1, 1).astype(jnp.float32)         # (1, 1)

    kernel = functools.partial(
        _regression_kernel,
        n_valid=n, eps=float(eps),
        block_cols=block_cols_eff, chunk_cols=chunk_cols, num_chunks=chunks_per_block)

    partials = pl.pallas_call(
        kernel,
        out_shape=jax.ShapeDtypeStruct((num_blocks, 1, chunk_cols), jnp.float32),
        grid=(num_blocks,),
        in_specs=[
            pl.BlockSpec((d_in, block_cols_eff), lambda i: (0, i)),   # x^T tiles, pipelined
            pl.BlockSpec(w1t.shape, lambda i: (0, 0)),                # weights/biases resident
            pl.BlockSpec(b1t.shape, lambda i: (0, 0)),
            pl.BlockSpec(w2t.shape, lambda i: (0, 0)),
            pl.BlockSpec(b2t.shape, lambda i: (0, 0)),
            pl.BlockSpec(w3t.shape, lambda i: (0, 0)),
            pl.BlockSpec(b3t.shape, lambda i: (0, 0)),
        ],
        out_specs=pl.BlockSpec((1, 1, chunk_cols), lambda i: (i, 0, 0)),
        compiler_params=pltpu.CompilerParams(
            dimension_semantics=("parallel",)),          # batch blocks independent -> megacore
    )(xt, w1t, b1t, w2t, b2t, w3t, b3t)

    return jnp.sum(partials) / n


def regression_forward(x, params, *, eps=EPS, compute_dtype=jnp.bfloat16,
                       block_cols=32768, chunk_cols=256):
    """x: (N, 14) (PyTorch layout). Returns (sum(y[y>eps]) - sum(y[y<-eps])) / N.

    Does ONE fused transpose+cast pass over x (half-size write in the bf16 default).
    If the producer can store x as (14, N), call regression_forward_xt directly and
    skip this pass entirely.
    """
    xt = x.T.astype(compute_dtype)
    return regression_forward_xt(xt, params, eps=eps,
                                 block_cols=block_cols, chunk_cols=chunk_cols)


def init_params(key):
    """Deterministic init mirroring nn.Linear shapes (stored as [in, out], bias (1, out))."""
    k1, k2, k3, k4, k5, k6 = jax.random.split(key, 6)

    def lin(kw, kb, fan_in, fan_out):
        bound = 1.0 / jnp.sqrt(jnp.float32(fan_in))
        w = jax.random.uniform(kw, (fan_in, fan_out), jnp.float32, -bound, bound)
        b = jax.random.uniform(kb, (1, fan_out), jnp.float32, -bound, bound)
        return w, b

    w1, b1 = lin(k1, k2, 14, 16)
    w2, b2 = lin(k3, k4, 16, 32)
    w3, b3 = lin(k5, k6, 32, 1)
    return (w1, b1, w2, b2, w3, b3)


def _reference(x, params, eps=EPS):
    """Pure-JAX f32 reference."""
    w1, b1, w2, b2, w3, b3 = params
    h1 = jnp.maximum(x @ w1 + b1, 0.0)
    h2 = jnp.maximum(h1 @ w2 + b2, 0.0)
    y = h2 @ w3 + b3
    pos = jnp.sum(jnp.where(y > eps, y, 0.0))
    neg = jnp.sum(jnp.where(y < -eps, y, 0.0))
    return (pos - neg) / x.shape[0]


def _reference_quantized(x, params, eps=EPS, dtype=jnp.bfloat16):
    """f32 math on dtype-quantized x/weights (matches the bf16-kernel operand rounding)."""
    w1, b1, w2, b2, w3, b3 = params
    q = lambda a: a.astype(dtype).astype(jnp.float32)
    h1 = jnp.maximum(q(x) @ q(w1) + b1, 0.0)
    h2 = jnp.maximum(h1 @ q(w2) + b2, 0.0)
    y = h2 @ q(w3) + b3
    pos = jnp.sum(jnp.where(y > eps, y, 0.0))
    neg = jnp.sum(jnp.where(y < -eps, y, 0.0))
    return (pos - neg) / x.shape[0]


if __name__ == "__main__":
    key = jax.random.PRNGKey(0)
    kx, kp = jax.random.split(key)
    params = init_params(kp)

    # 1) f32, small tiles, N not a multiple of chunk/block -> multi-block "parallel" grid,
    #    partial edge block and tail-column masking.
    n1 = 1000
    x1 = jax.random.normal(kx, (n1, 14), dtype=jnp.float32)
    out1 = regression_forward(x1, params, compute_dtype=jnp.float32,
                              block_cols=1024, chunk_cols=128)
    jax.block_until_ready(out1)
    ref1 = _reference(x1, params)
    assert jnp.allclose(out1, ref1, atol=1e-4, rtol=1e-4), (out1, ref1)

    # 2) f32, default tiling (big DMA blocks + fori_loop inner chunks).
    n2 = 20000
    x2 = jax.random.normal(jax.random.fold_in(kx, 1), (n2, 14), dtype=jnp.float32)
    out2 = regression_forward(x2, params, compute_dtype=jnp.float32)
    jax.block_until_ready(out2)
    ref2 = _reference(x2, params)
    assert jnp.allclose(out2, ref2, atol=1e-4, rtol=1e-4), (out2, ref2)

    # 3) bf16 default path via the pre-transposed producer layout (14, N) -> zero extra
    #    HBM passes over x.  Tolerance-checked against a bf16-quantized f32 reference.
    xt2_bf16 = x2.T.astype(jnp.bfloat16)     # "producer stores x transposed / bf16" layout
    out3 = regression_forward_xt(xt2_bf16, params)
    jax.block_until_ready(out3)
    ref3 = _reference_quantized(x2, params, dtype=jnp.bfloat16)
    assert bool(jnp.isfinite(out3)), out3
    assert jnp.allclose(out3, ref3, atol=2e-2, rtol=2e-2), (out3, ref3)

    print("KERNEL_OK")
</pallas_src>

<mosaic_0001>
module attributes {stable_mosaic.version = 11 : i64} {
  func.func @_regression_kernel(%arg0: i32, %arg1: memref<14x512xf32, #tpu.memory_space<vmem>>, %arg2: memref<16x14xf32, #tpu.memory_space<vmem>>, %arg3: memref<16x1xf32, #tpu.memory_space<vmem>>, %arg4: memref<32x16xf32, #tpu.memory_space<vmem>>, %arg5: memref<32x1xf32, #tpu.memory_space<vmem>>, %arg6: memref<1x32xf32, #tpu.memory_space<vmem>>, %arg7: memref<1x1xf32, #tpu.memory_space<vmem>>, %arg8: memref<1x1x128xf32, #tpu.memory_space<vmem>>) attributes {dimension_semantics = [#tpu.dimension_semantics<parallel>], iteration_bounds = array<i64: 2>, scalar_prefetch = 0 : i64, scratch_operands = 0 : i64, tpu.core_type = #tpu.core_type<tc>, window_params = [{transform_indices = @transform_0, window_bounds = array<i64: 14, 512>}, {pipeline_mode = #tpu.pipeline_mode<synchronous>, transform_indices = @transform_1, window_bounds = array<i64: 16, 14>}, {pipeline_mode = #tpu.pipeline_mode<synchronous>, transform_indices = @transform_2, window_bounds = array<i64: 16, 1>}, {pipeline_mode = #tpu.pipeline_mode<synchronous>, transform_indices = @transform_3, window_bounds = array<i64: 32, 16>}, {pipeline_mode = #tpu.pipeline_mode<synchronous>, transform_indices = @transform_4, window_bounds = array<i64: 32, 1>}, {pipeline_mode = #tpu.pipeline_mode<synchronous>, transform_indices = @transform_5, window_bounds = array<i64: 1, 32>}, {pipeline_mode = #tpu.pipeline_mode<synchronous>, transform_indices = @transform_6, window_bounds = array<i64: 1, 1>}, {transform_indices = @transform_7, window_bounds = array<i64: 1, 1, 128>}]} {
    %c512_i32 = arith.constant 512 : i32
    %0 = arith.muli %arg0, %c512_i32 : i32
    %c0 = arith.constant 0 : index
    %c0_0 = arith.constant 0 : index
    %1 = vector.load %arg2[%c0, %c0_0] : memref<16x14xf32, #tpu.memory_space<vmem>>, vector<16x14xf32>
    %c0_1 = arith.constant 0 : index
    %c0_2 = arith.constant 0 : index
    %2 = vector.load %arg4[%c0_1, %c0_2] : memref<32x16xf32, #tpu.memory_space<vmem>>, vector<32x16xf32>
    %c0_3 = arith.constant 0 : index
    %c0_4 = arith.constant 0 : index
    %3 = vector.load %arg6[%c0_3, %c0_4] : memref<1x32xf32, #tpu.memory_space<vmem>>, vector<1x32xf32>
    %c0_5 = arith.constant 0 : index
    %c0_6 = arith.constant 0 : index
    %4 = vector.load %arg3[%c0_5, %c0_6] : memref<16x1xf32, #tpu.memory_space<vmem>>, vector<16x1xf32>
    %5 = vector.shape_cast %4 : vector<16x1xf32> to vector<16x1xf32>
    %6 = vector.broadcast %5 : vector<16x1xf32> to vector<16x128xf32>
    %c0_7 = arith.constant 0 : index
    %c0_8 = arith.constant 0 : index
    %7 = vector.load %arg5[%c0_7, %c0_8] : memref<32x1xf32, #tpu.memory_space<vmem>>, vector<32x1xf32>
    %8 = vector.shape_cast %7 : vector<32x1xf32> to vector<32x1xf32>
    %9 = vector.broadcast %8 : vector<32x1xf32> to vector<32x128xf32>
    %c0_9 = arith.constant 0 : index
    %c0_10 = arith.constant 0 : index
    %10 = vector.load %arg7[%c0_9, %c0_10] : memref<1x1xf32, #tpu.memory_space<vmem>>, vector<1x1xf32>
    %11 = vector.shape_cast %10 : vector<1x1xf32> to vector<1x1xf32>
    %12 = vector.broadcast %11 : vector<1x1xf32> to vector<1x128xf32>
    %13 = tpu.iota {dimensions = array<i32: 1>} : vector<1x128xi32>
    %cst = arith.constant 0.000000e+00 : f32
    %14 = vector.broadcast %cst : f32 to vector<1x128xf32>
    %c0_i32 = arith.constant 0 : i32
    %c128_i32 = arith.constant 128 : i32
    %15 = arith.muli %c0_i32, %c128_i32 : i32
    %16 = tpu.assume_multiple %15, 128 : i32
    %c0_11 = arith.constant 0 : index
    %17 = arith.index_cast %16 : i32 to index
    %18 = vector.load %arg1[%c0_11, %17] : memref<14x512xf32, #tpu.memory_space<vmem>>, vector<14x128xf32>
    %cst_12 = arith.constant dense<0.000000e+00> : vector<16x128xf32>
    %19 = tpu.matmul %1, %18, %cst_12 {dimension_numbers = #tpu.dot_dimension_numbers<[1], [0], [0], [1], [0, 0, 1, 1], [], []>} : vector<16x14xf32>, vector<14x128xf32>, vector<16x128xf32> -> vector<16x128xf32>
    %20 = arith.addf %19, %6 : vector<16x128xf32>
    %cst_13 = arith.constant 0.000000e+00 : f32
    %21 = vector.broadcast %cst_13 : f32 to vector<16x128xf32>
    %22 = arith.maximumf %20, %21 : vector<16x128xf32>
    %cst_14 = arith.constant dense<0.000000e+00> : vector<32x128xf32>
    %23 = tpu.matmul %2, %22, %cst_14 {dimension_numbers = #tpu.dot_dimension_numbers<[1], [0], [0], [1], [0, 0, 1, 1], [], []>} : vector<32x16xf32>, vector<16x128xf32>, vector<32x128xf32> -> vector<32x128xf32>
    %24 = arith.addf %23, %9 : vector<32x128xf32>
    %cst_15 = arith.constant 0.000000e+00 : f32
    %25 = vector.broadcast %cst_15 : f32 to vector<32x128xf32>
    %26 = arith.maximumf %24, %25 : vector<32x128xf32>
    %cst_16 = arith.constant dense<0.000000e+00> : vector<1x128xf32>
    %27 = tpu.matmul %3, %26, %cst_16 {dimension_numbers = #tpu.dot_dimension_numbers<[1], [0], [0], [1], [0, 0, 1, 1], [], []>} : vector<1x32xf32>, vector<32x128xf32>, vector<1x128xf32> -> vector<1x128xf32>
    %28 = arith.addf %27, %12 : vector<1x128xf32>
    %29 = arith.addi %0, %16 : i32
    %30 = vector.broadcast %29 : i32 to vector<1x128xi32>
    %31 = arith.addi %30, %13 : vector<1x128xi32>
    %32 = math.absf %28 : vector<1x128xf32>
    %cst_17 = arith.constant 0.00999999977 : f32
    %33 = vector.broadcast %cst_17 : f32 to vector<1x128xf32>
    %34 = arith.cmpf ogt, %32, %33 : vector<1x128xf32>
    %c1000_i32 = arith.constant 1000 : i32
    %35 = vector.broadcast %c1000_i32 : i32 to vector<1x128xi32>
    %36 = arith.cmpi slt, %31, %35 : vector<1x128xi32>
    %37 = arith.andi %34, %36 : vector<1x128xi1>
    %cst_18 = arith.constant 0.000000e+00 : f32
    %38 = vector.broadcast %cst_18 : f32 to vector<1x128xf32>
    %39 = arith.select %37, %32, %38 : vector<1x128xi1>, vector<1x128xf32>
    %40 = arith.addf %14, %39 : vector<1x128xf32>
    %c1_i32 = arith.constant 1 : i32
    %c128_i32_19 = arith.constant 128 : i32
    %41 = arith.muli %c1_i32, %c128_i32_19 : i32
    %42 = tpu.assume_multiple %41, 128 : i32
    %c0_20 = arith.constant 0 : index
    %43 = arith.index_cast %42 : i32 to index
    %44 = vector.load %arg1[%c0_20, %43] : memref<14x512xf32, #tpu.memory_space<vmem>>, vector<14x128xf32>
    %cst_21 = arith.constant dense<0.000000e+00> : vector<16x128xf32>
    %45 = tpu.matmul %1, %44, %cst_21 {dimension_numbers = #tpu.dot_dimension_numbers<[1], [0], [0], [1], [0, 0, 1, 1], [], []>} : vector<16x14xf32>, vector<14x128xf32>, vector<16x128xf32> -> vector<16x128xf32>
    %46 = arith.addf %45, %6 : vector<16x128xf32>
    %cst_22 = arith.constant 0.000000e+00 : f32
    %47 = vector.broadcast %cst_22 : f32 to vector<16x128xf32>
    %48 = arith.maximumf %46, %47 : vector<16x128xf32>
    %cst_23 = arith.constant dense<0.000000e+00> : vector<32x128xf32>
    %49 = tpu.matmul %2, %48, %cst_23 {dimension_numbers = #tpu.dot_dimension_numbers<[1], [0], [0], [1], [0, 0, 1, 1], [], []>} : vector<32x16xf32>, vector<16x128xf32>, vector<32x128xf32> -> vector<32x128xf32>
    %50 = arith.addf %49, %9 : vector<32x128xf32>
    %cst_24 = arith.constant 0.000000e+00 : f32
    %51 = vector.broadcast %cst_24 : f32 to vector<32x128xf32>
    %52 = arith.maximumf %50, %51 : vector<32x128xf32>
    %cst_25 = arith.constant dense<0.000000e+00> : vector<1x128xf32>
    %53 = tpu.matmul %3, %52, %cst_25 {dimension_numbers = #tpu.dot_dimension_numbers<[1], [0], [0], [1], [0, 0, 1, 1], [], []>} : vector<1x32xf32>, vector<32x128xf32>, vector<1x128xf32> -> vector<1x128xf32>
    %54 = arith.addf %53, %12 : vector<1x128xf32>
    %55 = arith.addi %0, %42 : i32
    %56 = vector.broadcast %55 : i32 to vector<1x128xi32>
    %57 = arith.addi %56, %13 : vector<1x128xi32>
    %58 = math.absf %54 : vector<1x128xf32>
    %cst_26 = arith.constant 0.00999999977 : f32
    %59 = vector.broadcast %cst_26 : f32 to vector<1x128xf32>
    %60 = arith.cmpf ogt, %58, %59 : vector<1x128xf32>
    %c1000_i32_27 = arith.constant 1000 : i32
    %61 = vector.broadcast %c1000_i32_27 : i32 to vector<1x128xi32>
    %62 = arith.cmpi slt, %57, %61 : vector<1x128xi32>
    %63 = arith.andi %60, %62 : vector<1x128xi1>
    %cst_28 = arith.constant 0.000000e+00 : f32
    %64 = vector.broadcast %cst_28 : f32 to vector<1x128xf32>
    %65 = arith.select %63, %58, %64 : vector<1x128xi1>, vector<1x128xf32>
    %66 = arith.addf %40, %65 : vector<1x128xf32>
    %c2_i32 = arith.constant 2 : i32
    %c128_i32_29 = arith.constant 128 : i32
    %67 = arith.muli %c2_i32, %c128_i32_29 : i32
    %68 = tpu.assume_multiple %67, 128 : i32
    %c0_30 = arith.constant 0 : index
    %69 = arith.index_cast %68 : i32 to index
    %70 = vector.load %arg1[%c0_30, %69] : memref<14x512xf32, #tpu.memory_space<vmem>>, vector<14x128xf32>
    %cst_31 = arith.constant dense<0.000000e+00> : vector<16x128xf32>
    %71 = tpu.matmul %1, %70, %cst_31 {dimension_numbers = #tpu.dot_dimension_numbers<[1], [0], [0], [1], [0, 0, 1, 1], [], []>} : vector<16x14xf32>, vector<14x128xf32>, vector<16x128xf32> -> vector<16x128xf32>
    %72 = arith.addf %71, %6 : vector<16x128xf32>
    %cst_32 = arith.constant 0.000000e+00 : f32
    %73 = vector.broadcast %cst_32 : f32 to vector<16x128xf32>
    %74 = arith.maximumf %72, %73 : vector<16x128xf32>
    %cst_33 = arith.constant dense<0.000000e+00> : vector<32x128xf32>
    %75 = tpu.matmul %2, %74, %cst_33 {dimension_numbers = #tpu.dot_dimension_numbers<[1], [0], [0], [1], [0, 0, 1, 1], [], []>} : vector<32x16xf32>, vector<16x128xf32>, vector<32x128xf32> -> vector<32x128xf32>
    %76 = arith.addf %75, %9 : vector<32x128xf32>
    %cst_34 = arith.constant 0.000000e+00 : f32
    %77 = vector.broadcast %cst_34 : f32 to vector<32x128xf32>
    %78 = arith.maximumf %76, %77 : vector<32x128xf32>
    %cst_35 = arith.constant dense<0.000000e+00> : vector<1x128xf32>
    %79 = tpu.matmul %3, %78, %cst_35 {dimension_numbers = #tpu.dot_dimension_numbers<[1], [0], [0], [1], [0, 0, 1, 1], [], []>} : vector<1x32xf32>, vector<32x128xf32>, vector<1x128xf32> -> vector<1x128xf32>
    %80 = arith.addf %79, %12 : vector<1x128xf32>
    %81 = arith.addi %0, %68 : i32
    %82 = vector.broadcast %81 : i32 to vector<1x128xi32>
    %83 = arith.addi %82, %13 : vector<1x128xi32>
    %84 = math.absf %80 : vector<1x128xf32>
    %cst_36 = arith.constant 0.00999999977 : f32
    %85 = vector.broadcast %cst_36 : f32 to vector<1x128xf32>
    %86 = arith.cmpf ogt, %84, %85 : vector<1x128xf32>
    %c1000_i32_37 = arith.constant 1000 : i32
    %87 = vector.broadcast %c1000_i32_37 : i32 to vector<1x128xi32>
    %88 = arith.cmpi slt, %83, %87 : vector<1x128xi32>
    %89 = arith.andi %86, %88 : vector<1x128xi1>
    %cst_38 = arith.constant 0.000000e+00 : f32
    %90 = vector.broadcast %cst_38 : f32 to vector<1x128xf32>
    %91 = arith.select %89, %84, %90 : vector<1x128xi1>, vector<1x128xf32>
    %92 = arith.addf %66, %91 : vector<1x128xf32>
    %c3_i32 = arith.constant 3 : i32
    %c128_i32_39 = arith.constant 128 : i32
    %93 = arith.muli %c3_i32, %c128_i32_39 : i32
    %94 = tpu.assume_multiple %93, 128 : i32
    %c0_40 = arith.constant 0 : index
    %95 = arith.index_cast %94 : i32 to index
    %96 = vector.load %arg1[%c0_40, %95] : memref<14x512xf32, #tpu.memory_space<vmem>>, vector<14x128xf32>
    %cst_41 = arith.constant dense<0.000000e+00> : vector<16x128xf32>
    %97 = tpu.matmul %1, %96, %cst_41 {dimension_numbers = #tpu.dot_dimension_numbers<[1], [0], [0], [1], [0, 0, 1, 1], [], []>} : vector<16x14xf32>, vector<14x128xf32>, vector<16x128xf32> -> vector<16x128xf32>
    %98 = arith.addf %97, %6 : vector<16x128xf32>
    %cst_42 = arith.constant 0.000000e+00 : f32
    %99 = vector.broadcast %cst_42 : f32 to vector<16x128xf32>
    %100 = arith.maximumf %98, %99 : vector<16x128xf32>
    %cst_43 = arith.constant dense<0.000000e+00> : vector<32x128xf32>
    %101 = tpu.matmul %2, %100, %cst_43 {dimension_numbers = #tpu.dot_dimension_numbers<[1], [0], [0], [1], [0, 0, 1, 1], [], []>} : vector<32x16xf32>, vector<16x128xf32>, vector<32x128xf32> -> vector<32x128xf32>
    %102 = arith.addf %101, %9 : vector<32x128xf32>
    %cst_44 = arith.constant 0.000000e+00 : f32
    %103 = vector.broadcast %cst_44 : f32 to vector<32x128xf32>
    %104 = arith.maximumf %102, %103 : vector<32x128xf32>
    %cst_45 = arith.constant dense<0.000000e+00> : vector<1x128xf32>
    %105 = tpu.matmul %3, %104, %cst_45 {dimension_numbers = #tpu.dot_dimension_numbers<[1], [0], [0], [1], [0, 0, 1, 1], [], []>} : vector<1x32xf32>, vector<32x128xf32>, vector<1x128xf32> -> vector<1x128xf32>
    %106 = arith.addf %105, %12 : vector<1x128xf32>
    %107 = arith.addi %0, %94 : i32
    %108 = vector.broadcast %107 : i32 to vector<1x128xi32>
    %109 = arith.addi %108, %13 : vector<1x128xi32>
    %110 = math.absf %106 : vector<1x128xf32>
    %cst_46 = arith.constant 0.00999999977 : f32
    %111 = vector.broadcast %cst_46 : f32 to vector<1x128xf32>
    %112 = arith.cmpf ogt, %110, %111 : vector<1x128xf32>
    %c1000_i32_47 = arith.constant 1000 : i32
    %113 = vector.broadcast %c1000_i32_47 : i32 to vector<1x128xi32>
    %114 = arith.cmpi slt, %109, %113 : vector<1x128xi32>
    %115 = arith.andi %112, %114 : vector<1x128xi1>
    %cst_48 = arith.constant 0.000000e+00 : f32
    %116 = vector.broadcast %cst_48 : f32 to vector<1x128xf32>
    %117 = arith.select %115, %110, %116 : vector<1x128xi1>, vector<1x128xf32>
    %118 = arith.addf %92, %117 : vector<1x128xf32>
    %c4_i32 = arith.constant 4 : i32
    %119 = vector.shape_cast %118 : vector<1x128xf32> to vector<1x1x128xf32>
    %c0_49 = arith.constant 0 : index
    %c0_50 = arith.constant 0 : index
    %c0_51 = arith.constant 0 : index
    %120 = vector.load %arg8[%c0_49, %c0_50, %c0_51] : memref<1x1x128xf32, #tpu.memory_space<vmem>>, vector<1x1x128xf32>
    tpu.vector_store %arg8[%c0_49, %c0_50, %c0_51], %119 {strides = array<i32>} : memref<1x1x128xf32, #tpu.memory_space<vmem>>, vector<1x1x128xf32>,
    return
  }
  func.func @transform_0(%arg0: i32) -> (i32, i32) {
    %c0_i32 = arith.constant 0 : i32
    %c0_i32_0 = arith.constant 0 : i32
    return %c0_i32, %arg0 : i32, i32
  }
  func.func @transform_1(%arg0: i32) -> (i32, i32) {
    %c0_i32 = arith.constant 0 : i32
    %c0_i32_0 = arith.constant 0 : i32
    %c0_i32_1 = arith.constant 0 : i32
    return %c0_i32, %c0_i32_0 : i32, i32
  }
  func.func @transform_2(%arg0: i32) -> (i32, i32) {
    %c0_i32 = arith.constant 0 : i32
    %c0_i32_0 = arith.constant 0 : i32
    %c0_i32_1 = arith.constant 0 : i32
    return %c0_i32, %c0_i32_0 : i32, i32
  }
  func.func @transform_3(%arg0: i32) -> (i32, i32) {
    %c0_i32 = arith.constant 0 : i32
    %c0_i32_0 = arith.constant 0 : i32
    %c0_i32_1 = arith.constant 0 : i32
    return %c0_i32, %c0_i32_0 : i32, i32
  }
  func.func @transform_4(%arg0: i32) -> (i32, i32) {
    %c0_i32 = arith.constant 0 : i32
    %c0_i32_0 = arith.constant 0 : i32
    %c0_i32_1 = arith.constant 0 : i32
    return %c0_i32, %c0_i32_0 : i32, i32
  }
  func.func @transform_5(%arg0: i32) -> (i32, i32) {
    %c0_i32 = arith.constant 0 : i32
    %c0_i32_0 = arith.constant 0 : i32
    %c0_i32_1 = arith.constant 0 : i32
    return %c0_i32, %c0_i32_0 : i32, i32
  }
  func.func @transform_6(%arg0: i32) -> (i32, i32) {
    %c0_i32 = arith.constant 0 : i32
    %c0_i32_0 = arith.constant 0 : i32
    %c0_i32_1 = arith.constant 0 : i32
    return %c0_i32, %c0_i32_0 : i32, i32
  }
  func.func @transform_7(%arg0: i32) -> (i32, i32, i32) {
    %c0_i32 = arith.constant 0 : i32
    %c0_i32_0 = arith.constant 0 : i32
    %c0_i32_1 = arith.constant 0 : i32
    return %arg0, %c0_i32, %c0_i32_0 : i32, i32, i32
  }
}

</mosaic_0001>

<bundles_post_ra>
// kernel: tpu_custom_call.1
= control target key start
LH: loop header
LB: loop body
LE: loop exit
PB: predicated region body
PF: predicated region fallthrough
CT: control target
= control target key end

     0   :  { %s2234_s0 = inlined_call_operand.hbm [shape: f32[14,1000], index: 0, kind: input, shape index: {}]   ;;  %s2235_s1 = inlined_call_operand.vmem [shape: f32[16,14], index: 1, kind: input, shape index: {}]   ;;  %s2236_s2 = inlined_call_operand.vmem [shape: f32[16,1], index: 2, kind: input, shape index: {}]   ;;  %s2237_s3 = inlined_call_operand.vmem [shape: f32[32,16], index: 3, kind: input, shape index: {}]   ;;  %s2238_s4 = inlined_call_operand.vmem [shape: f32[32,1], index: 4, kind: input, shape index: {}]   ;;  %s2239_s5 = inlined_call_operand.vmem [shape: f32[1,32], index: 5, kind: input, shape index: {}]   ;;  %s2240_s6 = inlined_call_operand.<no memory space> [shape: f32[1,1], index: 6, kind: input, shape index: {}]   ;;  %s2241_s7 = inlined_call_operand.hbm [shape: f32[2,1,128], index: 7, kind: output, shape index: {}]  }
   0x1   :  { %v12_v0 = vstv %s2240_s6 }
   0x2   :  { %13 = vst [vmem:[#allocation2] sm:$0x1] %v12_v0 }
   0x3   :  { %14 = vsyncpa [#allocation4], 0 }
   0x4   :  { %16 = vsyncpa [#allocation4 + $0x1], 0 }
   0x5   :  { %17 = vsyncpa [#allocation5], 0 }
   0x6   :  { %19 = vsyncpa [#allocation5 + $0x1], 0  ;;  %s1885_s26 = smov 0   ;;  %s1887_s27 = smov 0  }
   0x7   :  { %s1889_s28 = smov 0   ;;  %s1891_s29 = smov 0  }
   0x8 LB: > { %s1906_s6 = sadd.s32 4294967295, %s1832_s29   ;;  %s1463_s30 = sadd.s32 4294967294, %s1832_s29   ;;  %s1832_s29 = sphi %s1891_s29, %s2257_s29   ;;  %s1828_s28 = sphi %s1889_s28, %s2256_s28   ;;  %s1824_s27 = sphi %s1887_s27, %s2255_s27   ;;  %s1820_s26 = sphi %s1885_s26, %s2254_s26  }
   0x9   : > { %s1910_s8 = sadd.s32 1, %s1832_s29   ;;  %s32_s9 = sadd.s32 1, %s1828_s28 }
   0xa   : > { %s29_s10 = ssub.s32 %s1832_s29, %s1910_s8  ;;  %p39_p0 = scmp.ne.s32.totalorder %s1828_s28, %s1824_s27 }
   0xb   : > { %p30_p1 = scmp.eq.s32.totalorder %s29_s10, 0  ;;  %p40_p2 = scmp.eq.s32.totalorder %s1832_s29, 0 }
   0xc   : > { %p45_p3 = scmp.ne.s32.totalorder %s1824_s27, %s1820_s26  ;;  %p46_p4 = scmp.eq.s32.totalorder %s1906_s6, 0 }
   0xd   : > { %s1922_s11 = scalar_select %p30_p1, %s1828_s28, %s32_s9  }
   0xe   : > { %p1924_p5 = por %p40_p2, %p39_p0  ;;  %p1928_p6 = por %p46_p4, %p45_p3 }
   0xf   : > { %p195_p7 = scmp.eq.s32.totalorder %s1906_s6, 1  ;;  %p201_p8 = scmp.eq.s32.totalorder %s1463_s30, 1 }
  0x10   : > { %s2245_s13 = scalar_select %p1928_p6, 1, 0 }
  0x11   : > { %p1698_p10 = scmp.lt.s32.totalorder %s1832_s29, 2  ;;  %p1935_p11 = por %p195_p7, %p39_p0 }
  0x12   : > { %p1939_p12 = por %p201_p8, %p45_p3  ;;  %s239_s16 = sand.u32 1, %s1828_s28  }
  0x13   : > { %s2246_s14 = scalar_select %p1935_p11, 1, 0 }
  0x14   : > { %s2247_s15 = scalar_select %p1939_p12, 1, 0 }
  0x15   : > { %s1513_s17 = sshll.u32 %s1832_s29, 9  ;;  %s1466_s18 = sshll.u32 %s239_s16, 6 }
  0x16   : > { %s1948_s21 = scalar_lea.hbm %s2234_s0, %s1513_s17  ;;  %s243_s22 = scalar_lea.vmem [#allocation3], %s1466_s18 }
  0x17   : > { %s250_s23 = sshll.u32 %s243_s22, 4  ;;  %p1952_p13 = pnand %p1698_p10, %p1924_p5  ;;  %s1956_s23 = int_to_ptr.vmem [resolvable:$true] %s250_s23 }
  0x18   : > { %s1959_s25 = scalar_lea.sflag [#allocation4], %s239_s16  ;;  %s1740_s30 = scalar_lea.hbm %s1948_s21, 1024 }
  0x19   : > { %p1741_p1 = scmp.ne.s32.totalorder %s1948_s21, %s1740_s30  ;;  %p1742_p2 = pneg %p1952_p13 }
  0x1a   : > { %s1745_s12 = scalar_lea.hbm %s2234_s0, 2048  ;;  %p1746_p5 = scmp.lt.s32.totalorder %s1948_s21, %s2234_s0 }
  0x1b   : > { %p1743_p3 = pnand %p1742_p2, %p1741_p1  ;;  %p1747_p7 = scmp.lt.s32.totalorder %s1745_s12, %s1740_s30 }
  0x1d   : > { %p1744_p4 = pneg %p1743_p3  ;;  %p1748_p8 = por %p1747_p7, %p1746_p5 }
  0x1f   : > { %p1749_p10 = pnand %p1748_p8, %p1744_p4 }
  0x21   : > { %1752 = shalt.err (!%p1749_p10)
}
  0x22   : > { %s1753_s16 = scalar_lea.vmem %s1956_s23, 1024  ;;  %s1834_s19 = smov [#allocation3]  }
  0x23   : > { %p1754_p9 = scmp.ne.s32.totalorder %s1956_s23, %s1753_s16  ;;  %s1758_s20 = sshll.u32 %s1834_s19, 4  ;;  %s1759_s20 = int_to_ptr.vmem [resolvable:$false] %s1758_s20 }
  0x24   : > { %s1760_s22 = scalar_lea.vmem %s1759_s20, 2048  ;;  %p1761_p3 = scmp.lt.s32.totalorder %s1956_s23, %s1759_s20 }
  0x25   : > { %p1756_p0 = pnand %p1754_p9, %p1742_p2  ;;  %p1762_p12 = scmp.lt.s32.totalorder %s1760_s22, %s1753_s16 }
  0x27   : > { %p1757_p1 = pneg %p1756_p0  ;;  %p1763_p11 = por %p1762_p12, %p1761_p3 }
  0x29   : > { %p1764_p6 = pnand %p1763_p11, %p1757_p1 }
  0x2b   : > { %1767 = shalt.err (!%p1764_p6)
}
  0x2c   : > { %s1835_s30 = smov 1024   ;;  %s1836_s9 = smov 512  }
  0x2d   : > { %s1837_s10 = smov 32   ;;  %p258_p9 = scmp.lt.s32.totalorder %s1832_s29, 3 }
  0x2e   : > { %1693 = dma.hbm_to_vmem [thread:$0]  (!%p1952_p13), %s1948_s21, 1024, %s1956_s23, %s1959_s25, %s1835_s30, %s1836_s9, %s1837_s10  }
  0x2f   : > { %p2249_p0 = scmp.ge.s32.totalorder %s1832_s29, 1 }
  0x31   : > { %p259_p2 = pnand %p2249_p0, %p258_p9 }
  0x32   : > { %s1984_s12 = sand.u32 (!%p259_p2), 1, %s1824_s27   ;;  %p2250_p6 = scmp.ne.s32.totalorder (!%p259_p2), %s2245_s13, 0 }
  0x33   : > { %262 = sbr.rel (%p259_p2) target bundleno = 1323 (0x52b), region = 48  ;;  %s1470_s17 = sshll.u32 (!%p259_p2), %s1984_s12, 6 }
  0x34   : > { %s265_s18 = scalar_lea.sflag (!%p259_p2), [#allocation4], %s1984_s12  ;;  %s1988_s16 = scalar_lea.vmem (!%p259_p2), [#allocation3], %s1470_s17 }
  0x38   : > { %1811 = dma.done.wait (%p2250_p6), %s265_s18, 1024  }
  0x39   : > { %1813 = vsyncadd (%p2250_p6), %s265_s18, 4294966272  ;;  %v1838_v1 = vmov 0   ;;  %vm364_vm0 = vcmask 1045504   ;;  %vm357_vm1 = vcmask 113664   ;;  %v356_v2 = vld [vmem:[%s1988_s16 + $0x20] sm:$0x3f] }
  0x3a   : > { %1738 = vset.pattern.permute.xlu0 %v1838_v1  ;;  %1739 = vset.pattern.permute.xlu1 %v1838_v1  ;;  %v355_v3 = vld [vmem:[%s1988_s16] sm:$0xff]  ;;  %v343_v9 = vld [vmem:[#allocation2] sm:$0x1]  ;;  %vm445_vm2 = vcmask 130048   ;;  %v322_v11 = vld [vmem:[%s2238_s4 + $0x18] sm:$0xff]  ;;  %v1839_v27 = vmov 0.0  }
  0x3b   : > { %v1999_v4 = vld [vmem:[%s2235_s1] sm:$0xff]  ;;  %1574 = vmatprep.subr.msk.mxu0 %vm364_vm0, %v356_v2  ;;  %v308_v5 = vld [vmem:[%s2236_s2 + $0x8] sm:$0xff]  ;;  %340 = vperm.xlu1 %1739, %v322_v11   ;;  %v321_v12 = vld [vmem:[%s2238_s4 + $0x10] sm:$0xff]  ;;  %vm1840_vm3 = vmmov 0   ;;  %vm547_vm4 = vcmask 261120   ;;  %s1510_s24 = sshll.u32 %s1906_s6, 4 }
  0x3c   : > { %1578 = vmatprep.mubr.msk.f32.mxu0 %vm357_vm1, %v1999_v4  ;;  %1575 = vmatpush3.msk.msra.mxu0 %vm364_vm0, %v356_v2  ;;  %v2011_v6 = vld [vmem:[%s2235_s1 + $0x8] sm:$0xff]  ;;  %v307_v7 = vld [vmem:[%s2236_s2] sm:$0xff]  ;;  %v2052_v24 = vld [vmem:[%s2237_s3 + $0x10] sm:$0xff]  ;;  %s297_s25 = scalar_lea.vmem [#allocation6], %s1984_s12  ;;  %s1395_s30 = scalar_lea.hbm %s2241_s7, %s1510_s24 }
  0x3d   : > { %316 = vperm.xlu0 %1738, %v308_v5   ;;  %1576 = vmatprep.subr.mxu0 %v355_v3  ;;  %v320_v8 = vld [vmem:[%s2238_s4 + $0x8] sm:$0xff]  ;;  %v2024_v10 = vld [vmem:[%s2237_s3] sm:$0xff]  ;;  %v2063_v26 = vld [vmem:[%s2237_s3 + $0x18] sm:$0xff]  ;;  %s1397_s19 = sshll.u32 %s297_s25, 4  ;;  %s1385_s9 = scalar_lea.sflag [#allocation5], %s1984_s12  ;;  %s1398_s19 = int_to_ptr.vmem [resolvable:$true] %s1397_s19 }
  0x3e   : > { %1577 = vmatpush3.msra.mxu0 %v355_v3  ;;  %1585 = vmatprep.mubr.msk.f32.mxu1 %vm445_vm2, %v2024_v10  ;;  %v319_v13 = vld [vmem:[%s2238_s4] sm:$0xff]  ;;  %v2046_v22 = vld [vmem:[%s2237_s3 + $0x8] sm:$0xff]  ;;  %v1491_v51 = vld [vmem:[%s1988_s16 + $0x30] sm:$0x3f]  ;;  %s1768_s10 = scalar_lea.vmem %s1398_s19, 16  ;;  %p2251_p12 = scmp.ne.s32.totalorder %s2246_s14, 0 }
  0x3f   : > { %1579 = vmatmul.mubr.msk.f32.vlgmr.msra.gmra.mxu0 %vm357_vm1, %v2011_v6  ;;  %335 = vperm.xlu1 %1739, %v321_v12   ;;  %v1481_v23 = vld [vmem:[%s1988_s16 + $0x28] sm:$0x3f]  ;;  %v2097_v48 = vld [vmem:[%s2239_s5] sm:$0x1]  ;;  %v1490_v52 = vld [vmem:[%s1988_s16 + $0x10] sm:$0xff]  ;;  %p1769_p11 = scmp.ne.s32.totalorder %s1398_s19, %s1768_s10  ;;  %s1841_s17 = smov [#allocation6]  }
  0x40   : > { %v1480_v25 = vld [vmem:[%s1988_s16 + $0x8] sm:$0xff]  ;;  %1591 = vmatprep.subr.mxu0 %v1839_v27  ;;  %1599 = vmatprep.mubr.msk.f32.mxu0 %vm1840_vm3, %v1839_v27  ;;  %v1501_v12 = vld [vmem:[%s1988_s16 + $0x38] sm:$0x3f]  ;;  %s1772_s18 = sshll.u32 %s1841_s17, 4  ;;  %s1773_s18 = int_to_ptr.vmem [resolvable:$false] %s1772_s18 }
  0x41   : > { %311 = vperm.xlu0 %1738, %v307_v7   ;;  %p1770_p13 = pnand %p1769_p11, %p2251_p12  ;;  %p1775_p5 = scmp.lt.s32.totalorder %s1398_s19, %s1773_s18 }
  0x43   : > { %325 = vperm.xlu1 %1739, %v319_v13   ;;  %v1500_v13 = vld [vmem:[%s1988_s16 + $0x18] sm:$0xff]  ;;  %s2154_s16 = sshll.u32 %s1906_s6, 9  ;;  %p1771_p4 = pneg %p1770_p13 }
  0x44   : > { %s872_s21 = sadd.s32 128, %s2154_s16  ;;  %s1123_s23 = sadd.s32 256, %s2154_s16 }
  0x45   : > { %330 = vperm.xlu0 %1738, %v320_v8   ;;  %s1374_s13 = sadd.s32 384, %s2154_s16  ;;  %s1774_s6 = scalar_lea.vmem %s1773_s18, 32 }
  0x46   : > { %p1776_p7 = scmp.lt.s32.totalorder %s1774_s6, %s1768_s10 }
  0x48   : > { %p1777_p8 = por %p1776_p7, %p1775_p5 }
  0x49   : > { %346 = vperm.xlu0 %1738, %v343_v9  }
  0x4a   : > { %p1778_p10 = pnand %p1777_p8, %p1771_p4 }
  0xb6   : > { %v2078_v28 = vpop.permute.xlu1 %340 }
  0xb8   : > { %v2037_v14 = vpop.permute.xlu0 %316 }
  0xba   : > { %v2080_v29 = vpop.permute.xlu1 %335 }
  0xbc   : > { %v2040_v17 = vpop.permute.xlu0 %311 }
  0xbe   : > { %v2085_v35 = vpop.permute.xlu1 %325 }
  0xc0   : > { %v2082_v33 = vpop.permute.xlu0 %330 }
  0xff   : > { %v1580_v15 = vpop.f32.mrf.mxu0 }
 0x100   : > { %v440_v16 = vadd.f32 %v1580_v15, %v2037_v14  ;;  %v349_v15 = vlaneseq }
 0x101   : > { %v434_v18 = vpop.f32.mrf.mxu0 }
 0x102   : > { %v444_v19 = vmax.f32 %v440_v16, 0.0  ;;  %v435_v20 = vadd.f32 %v434_v18, %v2040_v17  ;;  %v350_v16 = vshrl.u32 %v349_v15, 7 }
 0x104   : > { %v443_v21 = vmax.f32 %v435_v20, 0.0  ;;  %1581 = vmatprep.subr.mxu1 %v444_v19  ;;  %v351_v18 = vsub.s32 0, %v350_v16 }
 0x105   : > { %1582 = vmatpush3.msra.mxu1 %v444_v19  ;;  %v347_v19 = vpop.permute.xlu0 %346 }
 0x106   : > { %1583 = vmatprep.subr.mxu1 %v443_v21  ;;  %v2151_v20 = vrot.slane %v347_v19, %v351_v18 }
 0x107   : > { %1584 = vmatpush3.msra.mxu1 %v443_v21  ;;  %v2156_v21 = vand.u32 127, %v349_v15 }
 0x108   : > { %1586 = vmatmul.mubr.msk.f32.vlgmr.msra.gmra.mxu1 %vm445_vm2, %v2046_v22  ;;  %1602 = vmatprep.subr.msk.mxu1 %vm364_vm0, %v1481_v23 }
 0x109   : > { %1588 = vmatprep.mubr.msk.f32.mxu1 %vm445_vm2, %v2052_v24  ;;  %1603 = vmatpush3.msk.msra.mxu1 %vm364_vm0, %v1481_v23  ;;  %v622_v23 = vstv %s2154_s16 }
 0x10a   : > { %1604 = vmatprep.subr.mxu1 %v1480_v25 }
 0x10b   : > { %1605 = vmatpush3.msra.mxu1 %v1480_v25  ;;  %v623_v25 = vadd.s32 %v622_v23, %v2156_v21 }
 0x10c   : > { %1589 = vmatmul.mubr.msk.f32.gmra.mxu1 %vm445_vm2, %v2063_v26  ;;  %1619 = vmatprep.subr.mxu1 %v1839_v27 }
 0x10d   : > { %1606 = vmatprep.mubr.msk.f32.mxu1 %vm357_vm1, %v1999_v4  ;;  %vm626_vm6 = vcmp.lt.s32.totalorder %v623_v25, 1000 }
 0x110   : > { %1607 = vmatmul.mubr.msk.f32.vlgmr.msra.gmra.mxu1 %vm357_vm1, %v2011_v6 }
 0x111   : > { %1627 = vmatprep.mubr.msk.f32.mxu1 %vm1840_vm3, %v1839_v27 }
 0x1c8   : > { %v1587_v30 = vpop.f32.mrf.mxu1 }
 0x1c9   : > { %v530_v37 = vadd.f32 %v1587_v30, %v2082_v33 }
 0x1ca   : > { %v524_v31 = vpop.f32.mrf.mxu1 }
 0x1cb   : > { %v525_v41 = vadd.f32 %v524_v31, %v2085_v35  ;;  %v544_v45 = vmax.f32 %v530_v37, 0.0 }
 0x1cc   : > { %v1590_v32 = vpop.f32.mrf.mxu1 }
 0x1cd   : > { %v540_v34 = vadd.f32 %v1590_v32, %v2078_v28  ;;  %v543_v47 = vmax.f32 %v525_v41, 0.0 }
 0x1ce   : > { %v534_v36 = vpop.f32.mrf.mxu1 }
 0x1cf   : > { %v546_v38 = vmax.f32 %v540_v34, 0.0  ;;  %v535_v39 = vadd.f32 %v534_v36, %v2080_v29 }
 0x1d0   : > { %v1608_v40 = vpop.f32.mrf.mxu1 }
 0x1d1   : > { %v545_v42 = vmax.f32 %v535_v39, 0.0  ;;  %1592 = vmatpush3.msra.mxu0 %v546_v38  ;;  %v708_v43 = vadd.f32 %v1608_v40, %v2037_v14 }
 0x1d2   : > { %1593 = vmatprep.subr.mxu0 %v1839_v27  ;;  %v702_v44 = vpop.f32.mrf.mxu1 }
 0x1d3   : > { %1594 = vmatpush3.msra.mxu0 %v545_v42  ;;  %v703_v46 = vadd.f32 %v702_v44, %v2040_v17  ;;  %v712_v49 = vmax.f32 %v708_v43, 0.0 }
 0x1d4   : > { %1595 = vmatprep.subr.mxu0 %v1839_v27 }
 0x1d5   : > { %1596 = vmatpush3.msra.mxu0 %v544_v45  ;;  %v711_v50 = vmax.f32 %v703_v46, 0.0 }
 0x1d6   : > { %1597 = vmatprep.subr.mxu0 %v1839_v27 }
 0x1d7   : > { %1598 = vmatpush3.msra.mxu0 %v543_v47 }
 0x1d8   : > { %1600 = vmatmul.mubr.msk.f32.vlgmr.msra.gmra.mxu0 %vm547_vm4, %v2097_v48  ;;  %1609 = vmatprep.subr.mxu0 %v712_v49 }
 0x1d9   : > { %1610 = vmatpush3.msra.mxu0 %v712_v49  ;;  %1613 = vmatprep.mubr.msk.f32.mxu0 %vm445_vm2, %v2024_v10 }
 0x1da   : > { %1611 = vmatprep.subr.mxu0 %v711_v50 }
 0x1db   : > { %1612 = vmatpush3.msra.mxu0 %v711_v50 }
 0x1dc   : > { %1614 = vmatmul.mubr.msk.f32.vlgmr.msra.gmra.mxu0 %vm445_vm2, %v2046_v22  ;;  %1630 = vmatprep.subr.msk.mxu0 %vm364_vm0, %v1491_v51 }
 0x1dd   : > { %1616 = vmatprep.mubr.msk.f32.mxu0 %vm445_vm2, %v2052_v24  ;;  %1631 = vmatpush3.msk.msra.mxu0 %vm364_vm0, %v1491_v51 }
 0x1de   : > { %1632 = vmatprep.subr.mxu0 %v1490_v52 }
 0x1df   : > { %1633 = vmatpush3.msra.mxu0 %v1490_v52 }
 0x1e0   : > { %1617 = vmatmul.mubr.msk.f32.gmra.mxu0 %vm445_vm2, %v2063_v26  ;;  %1647 = vmatprep.subr.mxu0 %v1839_v27 }
 0x1e1   : > { %1634 = vmatprep.mubr.msk.f32.mxu0 %vm357_vm1, %v1999_v4 }
 0x1e4   : > { %1635 = vmatmul.mubr.msk.f32.vlgmr.msra.gmra.mxu0 %vm357_vm1, %v2011_v6 }
 0x1e5   : > { %1655 = vmatprep.mubr.msk.f32.mxu0 %vm1840_vm3, %v1839_v27 }
 0x298   : > { %v617_v53 = vpop.f32.mrf.mxu0 }
 0x29a   : > { %v1601_v54 = vpop.f32.mrf.mxu0 }
 0x29c   : > { %v1615_v55 = vpop.f32.mrf.mxu0 }
 0x29d   : > { %v785_v60 = vadd.f32 %v1615_v55, %v2082_v33 }
 0x29e   : > { %v779_v56 = vpop.f32.mrf.mxu0 }
 0x29f   : > { %v780_v0 = vadd.f32 %v779_v56, %v2085_v35  ;;  %v799_v5 = vmax.f32 %v785_v60, 0.0 }
 0x2a0   : > { %v1618_v57 = vpop.f32.mrf.mxu0 }
 0x2a1   : > { %v795_v58 = vadd.f32 %v1618_v57, %v2078_v28  ;;  %v798_v8 = vmax.f32 %v780_v0, 0.0 }
 0x2a2   : > { %v789_v59 = vpop.f32.mrf.mxu0 }
 0x2a3   : > { %v801_v61 = vmax.f32 %v795_v58, 0.0  ;;  %v790_v62 = vadd.f32 %v789_v59, %v2080_v29 }
 0x2a4   : > { %v1636_v63 = vpop.f32.mrf.mxu0 }
 0x2a5   : > { %v800_v1 = vmax.f32 %v790_v62, 0.0  ;;  %1620 = vmatpush3.msra.mxu1 %v801_v61  ;;  %v959_v2 = vadd.f32 %v1636_v63, %v2037_v14 }
 0x2a6   : > { %1621 = vmatprep.subr.mxu1 %v1839_v27  ;;  %v953_v3 = vpop.f32.mrf.mxu0 }
 0x2a7   : > { %1622 = vmatpush3.msra.mxu1 %v800_v1  ;;  %v954_v7 = vadd.f32 %v953_v3, %v2040_v17  ;;  %v963_v9 = vmax.f32 %v959_v2, 0.0 }
 0x2a8   : > { %1623 = vmatprep.subr.mxu1 %v1839_v27 }
 0x2a9   : > { %1624 = vmatpush3.msra.mxu1 %v799_v5  ;;  %v962_v11 = vmax.f32 %v954_v7, 0.0 }
 0x2aa   : > { %1625 = vmatprep.subr.mxu1 %v1839_v27 }
 0x2ab   : > { %1626 = vmatpush3.msra.mxu1 %v798_v8 }
 0x2ac   : > { %1628 = vmatmul.mubr.msk.f32.vlgmr.msra.gmra.mxu1 %vm547_vm4, %v2097_v48  ;;  %1637 = vmatprep.subr.mxu1 %v963_v9 }
 0x2ad   : > { %1638 = vmatpush3.msra.mxu1 %v963_v9  ;;  %1641 = vmatprep.mubr.msk.f32.mxu1 %vm445_vm2, %v2024_v10 }
 0x2ae   : > { %1639 = vmatprep.subr.mxu1 %v962_v11 }
 0x2af   : > { %1640 = vmatpush3.msra.mxu1 %v962_v11 }
 0x2b0   : > { %1642 = vmatmul.mubr.msk.f32.vlgmr.msra.gmra.mxu1 %vm445_vm2, %v2046_v22  ;;  %1658 = vmatprep.subr.msk.mxu1 %vm364_vm0, %v1501_v12 }
 0x2b1   : > { %1644 = vmatprep.mubr.msk.f32.mxu1 %vm445_vm2, %v2052_v24  ;;  %1659 = vmatpush3.msk.msra.mxu1 %vm364_vm0, %v1501_v12 }
 0x2b2   : > { %1660 = vmatprep.subr.mxu1 %v1500_v13 }
 0x2b3   : > { %1661 = vmatpush3.msra.mxu1 %v1500_v13 }
 0x2b4   : > { %1645 = vmatmul.mubr.msk.f32.gmra.mxu1 %vm445_vm2, %v2063_v26  ;;  %1675 = vmatprep.subr.mxu1 %v1839_v27 }
 0x2b5   : > { %1662 = vmatprep.mubr.msk.f32.mxu1 %vm357_vm1, %v1999_v4  ;;  %v618_v4 = vadd.f32 %v617_v53, %v2151_v20 }
 0x2b7   : > { %v624_v30 = vand.u32 2147483647, %v618_v4 }
 0x2b8   : > { %1663 = vmatmul.mubr.msk.f32.vlgmr.msra.gmra.mxu1 %vm357_vm1, %v2011_v6  ;;  %v873_v6 = vstv %s872_s21 }
 0x2b9   : > { %1683 = vmatprep.mubr.msk.f32.mxu1 %vm1840_vm3, %v1839_v27  ;;  %v874_v31 = vadd.s32 %v873_v6, %v2156_v21  ;;  %vm625_vm5 = vcmp.gt.f32.partialorder %v624_v30, 0.01 }
 0x2ba   : > { %vm627_vm8 = vmand %vm625_vm5, %vm626_vm6 }
 0x2bb   : > { %vm877_vm7 = vcmp.lt.s32.totalorder %v874_v31, 1000  ;;  %v628_v40 = vsel %vm627_vm8, %v624_v30, 0.0 }
 0x36c   : > { %v868_v32 = vpop.f32.mrf.mxu1 }
 0x36d   : > { %v869_v34 = vadd.f32 %v868_v32, %v2151_v20 }
 0x36e   : > { %v1629_v36 = vpop.f32.mrf.mxu1 }
 0x36f   : > { %v875_v37 = vand.u32 2147483647, %v869_v34 }
 0x370   : > { %v1643_v38 = vpop.f32.mrf.mxu1 }
 0x371   : > { %vm876_vm9 = vcmp.gt.f32.partialorder %v875_v37, 0.01  ;;  %v1036_v46 = vadd.f32 %v1643_v38, %v2082_v33 }
 0x372   : > { %vm878_vm10 = vmand %vm876_vm9, %vm877_vm7  ;;  %v1030_v39 = vpop.f32.mrf.mxu1 }
 0x373   : > { %v879_v41 = vsel %vm878_vm10, %v875_v37, 0.0  ;;  %v1031_v51 = vadd.f32 %v1030_v39, %v2085_v35  ;;  %v1050_v55 = vmax.f32 %v1036_v46, 0.0 }
 0x374   : > { %v880_v42 = vadd.f32 %v879_v41, %v628_v40  ;;  %v1646_v43 = vpop.f32.mrf.mxu1 }
 0x375   : > { %v1046_v44 = vadd.f32 %v1646_v43, %v2078_v28  ;;  %v1049_v57 = vmax.f32 %v1031_v51, 0.0 }
 0x376   : > { %v1040_v45 = vpop.f32.mrf.mxu1 }
 0x377   : > { %v1052_v47 = vmax.f32 %v1046_v44, 0.0  ;;  %v1041_v49 = vadd.f32 %v1040_v45, %v2080_v29 }
 0x378   : > { %v1664_v50 = vpop.f32.mrf.mxu1 }
 0x379   : > { %v1051_v52 = vmax.f32 %v1041_v49, 0.0  ;;  %1648 = vmatpush3.msra.mxu0 %v1052_v47  ;;  %v1210_v53 = vadd.f32 %v1664_v50, %v2037_v14  ;;  %v1124_v14 = vstv %s1123_s23 }
 0x37a   : > { %1649 = vmatprep.subr.mxu0 %v1839_v27  ;;  %v1204_v54 = vpop.f32.mrf.mxu1 }
 0x37b   : > { %1650 = vmatpush3.msra.mxu0 %v1051_v52  ;;  %v1205_v56 = vadd.f32 %v1204_v54, %v2040_v17  ;;  %v1214_v58 = vmax.f32 %v1210_v53, 0.0  ;;  %v1125_v17 = vadd.s32 %v1124_v14, %v2156_v21 }
 0x37c   : > { %1651 = vmatprep.subr.mxu0 %v1839_v27 }
 0x37d   : > { %1652 = vmatpush3.msra.mxu0 %v1050_v55  ;;  %v1213_v59 = vmax.f32 %v1205_v56, 0.0  ;;  %vm1128_vm11 = vcmp.lt.s32.totalorder %v1125_v17, 1000 }
 0x37e   : > { %1653 = vmatprep.subr.mxu0 %v1839_v27 }
 0x37f   : > { %1654 = vmatpush3.msra.mxu0 %v1049_v57 }
 0x380   : > { %1656 = vmatmul.mubr.msk.f32.vlgmr.msra.gmra.mxu0 %vm547_vm4, %v2097_v48  ;;  %1665 = vmatprep.subr.mxu0 %v1214_v58 }
 0x381   : > { %1666 = vmatpush3.msra.mxu0 %v1214_v58  ;;  %1669 = vmatprep.mubr.msk.f32.mxu0 %vm445_vm2, %v2024_v10 }
 0x382   : > { %1667 = vmatprep.subr.mxu0 %v1213_v59 }
 0x383   : > { %1668 = vmatpush3.msra.mxu0 %v1213_v59 }
 0x384   : > { %1670 = vmatmul.mubr.msk.f32.vlgmr.msra.gmra.mxu0 %vm445_vm2, %v2046_v22 }
 0x385   : > { %1672 = vmatprep.mubr.msk.f32.mxu0 %vm445_vm2, %v2052_v24 }
 0x388   : > { %1673 = vmatmul.mubr.msk.f32.gmra.mxu0 %vm445_vm2, %v2063_v26 }
 0x440   : > { %v1119_v60 = vpop.f32.mrf.mxu0 }
 0x441   : > { %v1120_v61 = vadd.f32 %v1119_v60, %v2151_v20 }
 0x442   : > { %v1657_v62 = vpop.f32.mrf.mxu0 }
 0x443   : > { %v1126_v10 = vand.u32 2147483647, %v1120_v61 }
 0x444   : > { %v1671_v63 = vpop.f32.mrf.mxu0 }
 0x445   : > { %vm1127_vm12 = vcmp.gt.f32.partialorder %v1126_v10, 0.01  ;;  %v1287_v3 = vadd.f32 %v1671_v63, %v2082_v33 }
 0x446   : > { %vm1129_vm13 = vmand %vm1127_vm12, %vm1128_vm11  ;;  %v1281_v22 = vpop.f32.mrf.mxu0 }
 0x447   : > { %v1130_v0 = vsel %vm1129_vm13, %v1126_v10, 0.0  ;;  %v1282_v8 = vadd.f32 %v1281_v22, %v2085_v35  ;;  %v1301_v11 = vmax.f32 %v1287_v3, 0.0 }
 0x448   : > { %v1131_v1 = vadd.f32 %v1130_v0, %v880_v42  ;;  %v1674_v24 = vpop.f32.mrf.mxu0 }
 0x449   : > { %v1297_v2 = vadd.f32 %v1674_v24, %v2078_v28  ;;  %v1300_v28 = vmax.f32 %v1282_v8, 0.0 }
 0x44a   : > { %v1291_v26 = vpop.f32.mrf.mxu0 }
 0x44b   : > { %v1303_v5 = vmax.f32 %v1297_v2, 0.0  ;;  %v1292_v7 = vadd.f32 %v1291_v26, %v2080_v29  ;;  %v1375_v29 = vstv %s1374_s13 }
 0x44c   : > { %v1376_v33 = vadd.s32 %v1375_v29, %v2156_v21 }
 0x44d   : > { %v1302_v9 = vmax.f32 %v1292_v7, 0.0  ;;  %1676 = vmatpush3.msra.mxu1 %v1303_v5 }
 0x44e   : > { %1677 = vmatprep.subr.mxu1 %v1839_v27  ;;  %vm1379_vm14 = vcmp.lt.s32.totalorder %v1376_v33, 1000 }
 0x44f   : > { %1678 = vmatpush3.msra.mxu1 %v1302_v9 }
 0x450   : > { %1679 = vmatprep.subr.mxu1 %v1839_v27 }
 0x451   : > { %1680 = vmatpush3.msra.mxu1 %v1301_v11 }
 0x452   : > { %1681 = vmatprep.subr.mxu1 %v1839_v27 }
 0x453   : > { %1682 = vmatpush3.msra.mxu1 %v1300_v28 }
 0x454   : > { %1684 = vmatmul.mubr.msk.f32.vlgmr.msra.gmra.mxu1 %vm547_vm4, %v2097_v48 }
 0x514   : > { %v1370_v35 = vpop.f32.mrf.mxu1 }
 0x515   : > { %v1371_v12 = vadd.f32 %v1370_v35, %v2151_v20 }
 0x516   : > { %v1685_v13 = vpop.f32.mrf.mxu1 }
 0x517   : > { %v1377_v15 = vand.u32 2147483647, %v1371_v12 }
 0x519   : > { %vm1378_vm15 = vcmp.gt.f32.partialorder %v1377_v15, 0.01 }
 0x51a   : > { %vm1380_vm0 = vmand %vm1378_vm15, %vm1379_vm14 }
 0x51b   : > { %v1381_v27 = vsel %vm1380_vm0, %v1377_v15, 0.0 }
 0x51c   : > { %v1382_v16 = vadd.f32 %v1381_v27, %v1131_v1 }
 0x51e   : > { %1383 = vst [vmem:[%s297_s25] sm:$0x1] %v1382_v16 }
 0x51f   : > { %1781 = shalt.err (!%p1778_p10)
}
 0x520   : > { %s1782_s16 = scalar_lea.hbm %s1395_s30, 16  ;;  %s1786_s23 = scalar_lea.hbm %s2241_s7, 32 }
 0x521   : > { %p1783_p1 = scmp.ne.s32.totalorder %s1395_s30, %s1782_s16  ;;  %p1787_p0 = scmp.lt.s32.totalorder %s1395_s30, %s2241_s7 }
 0x522   : > { %p1788_p2 = scmp.lt.s32.totalorder %s1786_s23, %s1782_s16 }
 0x523   : > { %p1784_p3 = pnand %p1783_p1, %p2251_p12 }
 0x524   : > { %p1789_p6 = por %p1788_p2, %p1787_p0 }
 0x525   : > { %p1785_p9 = pneg %p1784_p3 }
 0x527   : > { %p1790_p11 = pnand %p1789_p6, %p1785_p9 }
 0x529   : > { %1793 = shalt.err (!%p1790_p11)
}
 0x52a   : > { %1688 = dma.vmem_to_hbm [thread:$0]  (%p2251_p12), %s1398_s19, 16, %s1395_s30, %s1385_s9  }
 0x52b PF: > { %s1409_s25 = sand.u32 1, %s1820_s26   ;;  %p2252_p13 = scmp.ne.s32.totalorder %s2247_s15, 0 }
 0x52c   : > { %p2253_p4 = scmp.ge.s32.totalorder %s1832_s29, 2  ;;  %s1410_s20 = scalar_lea.sflag [#allocation5], %s1409_s25 }
 0x52e   : > { %p1695_p5 = pnand %p2253_p4, %p2252_p13 }
 0x530   : > { %p1696_p7 = pneg %p1695_p5 }
 0x532   : > { %1815 = dma.done.wait (%p1696_p7), %s1410_s20, 16  }
 0x533   : > { %1817 = vsyncadd (%p1696_p7), %s1410_s20, 4294967280  ;;  %p22_p8 = scmp.ge.s32.totalorder %s1910_s8, 4   ;;  %s2254_s26 = smov %s1824_s27 }
 0x534   : > { %s2255_s27 = smov %s1828_s28  ;;  %s2256_s28 = smov %s1922_s11 }
 0x535   : > { %s2257_s29 = smov %s1910_s8  ;;  %24 = sbr.rel (!%p22_p8) target bundleno = 8 (0x8), region = 96 }
 0x53a   :  { %1414 = vsyncpa [#allocation4], 1 }
 0x53b   :  { %1416 = vsyncpa [#allocation4 + $0x1], 1 }
 0x53c   :  { %1417 = vsyncpa [#allocation5], 1 }
 0x53d   :  { %1419 = vsyncpa [#allocation5 + $0x1], 1 }

</bundles_post_ra>
